<compile_context>
chip_gen: v6e
topology: v6e:2x2x1
jax: 0.10.0
libtpu: 0.0.40
codegen_flags: <defaults>
</compile_context>

<pallas_src>
import jax
import jax.numpy as jnp
from jax.experimental import pallas as pl
from jax.experimental.pallas import tpu as pltpu


def _synthconv_kernel(x_ref, w_ref, b_ref, o_ref):
    """Single-input-channel Conv1d (stride 1) + flatten for one batch tile.

    x_ref: (B_t, L)    VMEM (input dtype)
    w_ref: (C, K)      f32, SMEM (scalar reads)
    b_ref: (C,)        f32, SMEM (scalar reads)
    o_ref: (B_t, C*T)  VMEM, T = L - K + 1 (lane-dense flattened output,
                       matching torch's contiguous .view(B, -1))
    """
    x = x_ref[...].astype(jnp.float32)            # (B_t, L), f32 accumulate
    b_t, l = x.shape
    c_out, ksize = w_ref.shape
    t_out = l - ksize + 1

    # C persistent per-channel accumulators; bias folded into the init
    # (scalar broadcast from SMEM -> no extra full-tile VALU pass).
    accs = [jnp.full((b_t, t_out), b_ref[c], dtype=jnp.float32)
            for c in range(c_out)]

    # k outermost: only ONE shifted (B_t, T) slice is live at a time and it
    # is shared by all C channels (K cross-lane shifts total, not K*C).
    for k in range(ksize):                        # K, C tiny & static
        xs = x[:, k:k + t_out]
        for c in range(c_out):
            accs[c] = accs[c] + w_ref[c, k] * xs  # scalar * (B_t, T) on VPU

    # Store each finished channel directly into its lane range of the
    # flattened output block (static offsets; one HBM writeback per tile).
    for c in range(c_out):
        o_ref[:, c * t_out:(c + 1) * t_out] = accs[c].astype(o_ref.dtype)


def _vmem_limit_bytes():
    """Generation-aware VMEM limit: ~3/4 of physical, <= 96 MiB."""
    cap = 64 * 1024 * 1024                        # conservative (v7x per-TC)
    try:
        info = pltpu.get_tpu_info()
        cap = int(getattr(info, "vmem_capacity_bytes", cap) or cap)
    except Exception:
        pass
    return int(min((cap * 3) // 4, 96 * 1024 * 1024))


def _pick_batch_tile(batch, length, t_out, c_out, n_out,
                     in_bytes, out_bytes, vmem_limit):
    """Batch-tile rows: multiple of 8, as big as fits ~half the VMEM limit
    (double-buffered x + out blocks + in-kernel f32 temporaries), capped at
    1024 rows, and always leaving >= 2 (preferably ~8) grid steps for
    megacore sharding / DMA-compute overlap when the batch allows it."""
    if batch <= 8:
        return batch                              # block == full dim

    budget = vmem_limit // 2                      # headroom for compiler use
    per_row = (2 * in_bytes * length              # double-buffered x block
               + 2 * out_bytes * n_out            # double-buffered out block
               + 4 * (length + (c_out + 2) * t_out))  # f32 in-kernel temps
    rows = budget // max(per_row, 1)
    rows = max(8, min(1024, (rows // 8) * 8))

    # Keep at least 2 (preferably ~8) grid steps so both v7x TCs get work.
    if batch >= 64:
        target = -(-batch // 8)
    elif batch >= 16:
        target = -(-batch // 2)
    else:
        target = batch
    target = ((target + 7) // 8) * 8
    rows = min(rows, max(8, target))
    rows = min(rows, ((batch + 7) // 8) * 8)
    return rows


def synth_conv_forward(x, weight, bias, *, out_dtype=None):
    """x: (B, L); weight: (C, 1, K); bias: (C,).  Returns (B, C*(L-K+1))."""
    B, L = x.shape
    C, in_c, K = weight.shape
    if in_c != 1:
        raise ValueError("SynthConv forward implies a single input channel")
    if L < K:
        raise ValueError(f"sequence length {L} shorter than kernel size {K}")
    T = L - K + 1
    N = C * T
    out_dtype = out_dtype if out_dtype is not None else x.dtype

    # Only the tiny parameter tensors are cast (C*K + C scalars, SMEM);
    # x is NOT upcast in the wrapper (no hidden full-HBM copy).
    w2d = weight.reshape(C, K).astype(jnp.float32)
    b1d = bias.reshape(C).astype(jnp.float32)

    vmem_limit = _vmem_limit_bytes()
    b_tile = _pick_batch_tile(
        B, L, T, C, N,
        jnp.dtype(x.dtype).itemsize, jnp.dtype(out_dtype).itemsize,
        vmem_limit)
    grid = (pl.cdiv(B, b_tile),)                  # ragged tail handled by Pallas

    return pl.pallas_call(
        _synthconv_kernel,
        out_shape=jax.ShapeDtypeStruct((B, N), out_dtype),
        grid_spec=pltpu.PrefetchScalarGridSpec(
            num_scalar_prefetch=0,
            grid=grid,
            in_specs=[
                pl.BlockSpec((b_tile, L), lambda i: (i, 0)),     # x tile (VMEM)
                pl.BlockSpec(memory_space=pltpu.SMEM),           # weights (C,K)
                pl.BlockSpec(memory_space=pltpu.SMEM),           # bias (C,)
            ],
            out_specs=pl.BlockSpec((b_tile, N), lambda i: (i, 0)),
        ),
        compiler_params=pltpu.CompilerParams(
            dimension_semantics=("parallel",),    # megacore / v7x 2-TC sharding
            vmem_limit_bytes=vmem_limit,
        ),
    )(x, w2d, b1d)


def _reference(x, weight, bias):
    """Pure-JAX reference (lax conv) for correctness checking."""
    xin = x[:, None, :].astype(jnp.float32)                  # (B, 1, L)  NCW
    out = jax.lax.conv_general_dilated(
        xin, weight.astype(jnp.float32),
        window_strides=(1,), padding="VALID",
        dimension_numbers=("NCH", "OIH", "NCH"),
    ) + bias[None, :, None]
    return out.reshape(out.shape[0], -1)


if __name__ == "__main__":
    # Module defaults: inp_channel=1, out_channel=3, ksize=6, stride=1.
    B, L = 2, 16
    C, K = 3, 6

    key = jax.random.PRNGKey(0)
    kx, kw, kb = jax.random.split(key, 3)

    # PyTorch Conv1d-style uniform init, bound 1/sqrt(fan_in).
    fan_in = 1 * K
    bound = 1.0 / (fan_in ** 0.5)
    weight = jax.random.uniform(kw, (C, 1, K), jnp.float32, -bound, bound)
    bias = jax.random.uniform(kb, (C,), jnp.float32, -bound, bound)
    x = jax.random.normal(kx, (B, L), jnp.float32)

    y = synth_conv_forward(x, weight, bias)
    y = jax.block_until_ready(y)

    y_ref = _reference(x, weight, bias)
    assert y.shape == (B, C * (L - K + 1)), y.shape
    assert jnp.allclose(y, y_ref, atol=1e-5, rtol=1e-5), "mismatch vs reference"

    print("KERNEL_OK")
</pallas_src>

<mosaic_0001>
module attributes {stable_mosaic.version = 11 : i64} {
  func.func @_synthconv_kernel(%arg0: i32, %arg1: memref<2x16xf32, #tpu.memory_space<vmem>>, %arg2: memref<3x6xf32, #tpu.memory_space<smem>>, %arg3: memref<3xf32, #tpu.memory_space<smem>>, %arg4: memref<2x33xf32, #tpu.memory_space<vmem>>) attributes {dimension_semantics = [#tpu.dimension_semantics<parallel>], iteration_bounds = array<i64: 1>, scalar_prefetch = 0 : i64, scratch_operands = 0 : i64, tpu.core_type = #tpu.core_type<tc>, window_params = [{transform_indices = @transform_0, window_bounds = array<i64: 2, 16>}, {transform_indices = @transform_1, window_bounds = array<i64: 3, 6>}, {transform_indices = @transform_2, window_bounds = array<i64: 3>}, {transform_indices = @transform_3, window_bounds = array<i64: 2, 33>}]} {
    %c0 = arith.constant 0 : index
    %c0_0 = arith.constant 0 : index
    %0 = vector.load %arg1[%c0, %c0_0] : memref<2x16xf32, #tpu.memory_space<vmem>>, vector<2x16xf32>
    %c0_1 = arith.constant 0 : index
    %1 = memref.load %arg3[%c0_1] : memref<3xf32, #tpu.memory_space<smem>>
    %2 = vector.broadcast %1 : f32 to vector<2x11xf32>
    %c1 = arith.constant 1 : index
    %3 = memref.load %arg3[%c1] : memref<3xf32, #tpu.memory_space<smem>>
    %4 = vector.broadcast %3 : f32 to vector<2x11xf32>
    %c2 = arith.constant 2 : index
    %5 = memref.load %arg3[%c2] : memref<3xf32, #tpu.memory_space<smem>>
    %6 = vector.broadcast %5 : f32 to vector<2x11xf32>
    %7 = vector.extract_strided_slice %0 {offsets = [0, 0], sizes = [2, 11], strides = [1, 1]} : vector<2x16xf32> to vector<2x11xf32>
    %c0_2 = arith.constant 0 : index
    %c0_3 = arith.constant 0 : index
    %8 = memref.load %arg2[%c0_2, %c0_3] : memref<3x6xf32, #tpu.memory_space<smem>>
    %9 = vector.broadcast %8 : f32 to vector<2x11xf32>
    %10 = arith.mulf %9, %7 : vector<2x11xf32>
    %11 = arith.addf %2, %10 : vector<2x11xf32>
    %c1_4 = arith.constant 1 : index
    %c0_5 = arith.constant 0 : index
    %12 = memref.load %arg2[%c1_4, %c0_5] : memref<3x6xf32, #tpu.memory_space<smem>>
    %13 = vector.broadcast %12 : f32 to vector<2x11xf32>
    %14 = arith.mulf %13, %7 : vector<2x11xf32>
    %15 = arith.addf %4, %14 : vector<2x11xf32>
    %c2_6 = arith.constant 2 : index
    %c0_7 = arith.constant 0 : index
    %16 = memref.load %arg2[%c2_6, %c0_7] : memref<3x6xf32, #tpu.memory_space<smem>>
    %17 = vector.broadcast %16 : f32 to vector<2x11xf32>
    %18 = arith.mulf %17, %7 : vector<2x11xf32>
    %19 = arith.addf %6, %18 : vector<2x11xf32>
    %20 = vector.extract_strided_slice %0 {offsets = [0, 1], sizes = [2, 11], strides = [1, 1]} : vector<2x16xf32> to vector<2x11xf32>
    %c0_8 = arith.constant 0 : index
    %c1_9 = arith.constant 1 : index
    %21 = memref.load %arg2[%c0_8, %c1_9] : memref<3x6xf32, #tpu.memory_space<smem>>
    %22 = vector.broadcast %21 : f32 to vector<2x11xf32>
    %23 = arith.mulf %22, %20 : vector<2x11xf32>
    %24 = arith.addf %11, %23 : vector<2x11xf32>
    %c1_10 = arith.constant 1 : index
    %c1_11 = arith.constant 1 : index
    %25 = memref.load %arg2[%c1_10, %c1_11] : memref<3x6xf32, #tpu.memory_space<smem>>
    %26 = vector.broadcast %25 : f32 to vector<2x11xf32>
    %27 = arith.mulf %26, %20 : vector<2x11xf32>
    %28 = arith.addf %15, %27 : vector<2x11xf32>
    %c2_12 = arith.constant 2 : index
    %c1_13 = arith.constant 1 : index
    %29 = memref.load %arg2[%c2_12, %c1_13] : memref<3x6xf32, #tpu.memory_space<smem>>
    %30 = vector.broadcast %29 : f32 to vector<2x11xf32>
    %31 = arith.mulf %30, %20 : vector<2x11xf32>
    %32 = arith.addf %19, %31 : vector<2x11xf32>
    %33 = vector.extract_strided_slice %0 {offsets = [0, 2], sizes = [2, 11], strides = [1, 1]} : vector<2x16xf32> to vector<2x11xf32>
    %c0_14 = arith.constant 0 : index
    %c2_15 = arith.constant 2 : index
    %34 = memref.load %arg2[%c0_14, %c2_15] : memref<3x6xf32, #tpu.memory_space<smem>>
    %35 = vector.broadcast %34 : f32 to vector<2x11xf32>
    %36 = arith.mulf %35, %33 : vector<2x11xf32>
    %37 = arith.addf %24, %36 : vector<2x11xf32>
    %c1_16 = arith.constant 1 : index
    %c2_17 = arith.constant 2 : index
    %38 = memref.load %arg2[%c1_16, %c2_17] : memref<3x6xf32, #tpu.memory_space<smem>>
    %39 = vector.broadcast %38 : f32 to vector<2x11xf32>
    %40 = arith.mulf %39, %33 : vector<2x11xf32>
    %41 = arith.addf %28, %40 : vector<2x11xf32>
    %c2_18 = arith.constant 2 : index
    %c2_19 = arith.constant 2 : index
    %42 = memref.load %arg2[%c2_18, %c2_19] : memref<3x6xf32, #tpu.memory_space<smem>>
    %43 = vector.broadcast %42 : f32 to vector<2x11xf32>
    %44 = arith.mulf %43, %33 : vector<2x11xf32>
    %45 = arith.addf %32, %44 : vector<2x11xf32>
    %46 = vector.extract_strided_slice %0 {offsets = [0, 3], sizes = [2, 11], strides = [1, 1]} : vector<2x16xf32> to vector<2x11xf32>
    %c0_20 = arith.constant 0 : index
    %c3 = arith.constant 3 : index
    %47 = memref.load %arg2[%c0_20, %c3] : memref<3x6xf32, #tpu.memory_space<smem>>
    %48 = vector.broadcast %47 : f32 to vector<2x11xf32>
    %49 = arith.mulf %48, %46 : vector<2x11xf32>
    %50 = arith.addf %37, %49 : vector<2x11xf32>
    %c1_21 = arith.constant 1 : index
    %c3_22 = arith.constant 3 : index
    %51 = memref.load %arg2[%c1_21, %c3_22] : memref<3x6xf32, #tpu.memory_space<smem>>
    %52 = vector.broadcast %51 : f32 to vector<2x11xf32>
    %53 = arith.mulf %52, %46 : vector<2x11xf32>
    %54 = arith.addf %41, %53 : vector<2x11xf32>
    %c2_23 = arith.constant 2 : index
    %c3_24 = arith.constant 3 : index
    %55 = memref.load %arg2[%c2_23, %c3_24] : memref<3x6xf32, #tpu.memory_space<smem>>
    %56 = vector.broadcast %55 : f32 to vector<2x11xf32>
    %57 = arith.mulf %56, %46 : vector<2x11xf32>
    %58 = arith.addf %45, %57 : vector<2x11xf32>
    %59 = vector.extract_strided_slice %0 {offsets = [0, 4], sizes = [2, 11], strides = [1, 1]} : vector<2x16xf32> to vector<2x11xf32>
    %c0_25 = arith.constant 0 : index
    %c4 = arith.constant 4 : index
    %60 = memref.load %arg2[%c0_25, %c4] : memref<3x6xf32, #tpu.memory_space<smem>>
    %61 = vector.broadcast %60 : f32 to vector<2x11xf32>
    %62 = arith.mulf %61, %59 : vector<2x11xf32>
    %63 = arith.addf %50, %62 : vector<2x11xf32>
    %c1_26 = arith.constant 1 : index
    %c4_27 = arith.constant 4 : index
    %64 = memref.load %arg2[%c1_26, %c4_27] : memref<3x6xf32, #tpu.memory_space<smem>>
    %65 = vector.broadcast %64 : f32 to vector<2x11xf32>
    %66 = arith.mulf %65, %59 : vector<2x11xf32>
    %67 = arith.addf %54, %66 : vector<2x11xf32>
    %c2_28 = arith.constant 2 : index
    %c4_29 = arith.constant 4 : index
    %68 = memref.load %arg2[%c2_28, %c4_29] : memref<3x6xf32, #tpu.memory_space<smem>>
    %69 = vector.broadcast %68 : f32 to vector<2x11xf32>
    %70 = arith.mulf %69, %59 : vector<2x11xf32>
    %71 = arith.addf %58, %70 : vector<2x11xf32>
    %72 = vector.extract_strided_slice %0 {offsets = [0, 5], sizes = [2, 11], strides = [1, 1]} : vector<2x16xf32> to vector<2x11xf32>
    %c0_30 = arith.constant 0 : index
    %c5 = arith.constant 5 : index
    %73 = memref.load %arg2[%c0_30, %c5] : memref<3x6xf32, #tpu.memory_space<smem>>
    %74 = vector.broadcast %73 : f32 to vector<2x11xf32>
    %75 = arith.mulf %74, %72 : vector<2x11xf32>
    %76 = arith.addf %63, %75 : vector<2x11xf32>
    %c1_31 = arith.constant 1 : index
    %c5_32 = arith.constant 5 : index
    %77 = memref.load %arg2[%c1_31, %c5_32] : memref<3x6xf32, #tpu.memory_space<smem>>
    %78 = vector.broadcast %77 : f32 to vector<2x11xf32>
    %79 = arith.mulf %78, %72 : vector<2x11xf32>
    %80 = arith.addf %67, %79 : vector<2x11xf32>
    %c2_33 = arith.constant 2 : index
    %c5_34 = arith.constant 5 : index
    %81 = memref.load %arg2[%c2_33, %c5_34] : memref<3x6xf32, #tpu.memory_space<smem>>
    %82 = vector.broadcast %81 : f32 to vector<2x11xf32>
    %83 = arith.mulf %82, %72 : vector<2x11xf32>
    %84 = arith.addf %71, %83 : vector<2x11xf32>
    %c0_35 = arith.constant 0 : index
    %c0_36 = arith.constant 0 : index
    %85 = vector.load %arg4[%c0_35, %c0_36] : memref<2x33xf32, #tpu.memory_space<vmem>>, vector<2x11xf32>
    tpu.vector_store %arg4[%c0_35, %c0_36], %76 {strides = array<i32>} : memref<2x33xf32, #tpu.memory_space<vmem>>, vector<2x11xf32>,
    %c0_37 = arith.constant 0 : index
    %c11 = arith.constant 11 : index
    %86 = vector.load %arg4[%c0_37, %c11] : memref<2x33xf32, #tpu.memory_space<vmem>>, vector<2x11xf32>
    tpu.vector_store %arg4[%c0_37, %c11], %80 {strides = array<i32>} : memref<2x33xf32, #tpu.memory_space<vmem>>, vector<2x11xf32>,
    %c0_38 = arith.constant 0 : index
    %c22 = arith.constant 22 : index
    %87 = vector.load %arg4[%c0_38, %c22] : memref<2x33xf32, #tpu.memory_space<vmem>>, vector<2x11xf32>
    tpu.vector_store %arg4[%c0_38, %c22], %84 {strides = array<i32>} : memref<2x33xf32, #tpu.memory_space<vmem>>, vector<2x11xf32>,
    return
  }
  func.func @transform_0(%arg0: i32) -> (i32, i32) {
    %c0_i32 = arith.constant 0 : i32
    %c0_i32_0 = arith.constant 0 : i32
    return %arg0, %c0_i32 : i32, i32
  }
  func.func @transform_1(%arg0: i32) -> (i32, i32) {
    %c0_i32 = arith.constant 0 : i32
    %c0_i32_0 = arith.constant 0 : i32
    %c0_i32_1 = arith.constant 0 : i32
    return %c0_i32, %c0_i32_0 : i32, i32
  }
  func.func @transform_2(%arg0: i32) -> i32 {
    %c0_i32 = arith.constant 0 : i32
    %c0_i32_0 = arith.constant 0 : i32
    return %c0_i32 : i32
  }
  func.func @transform_3(%arg0: i32) -> (i32, i32) {
    %c0_i32 = arith.constant 0 : i32
    %c0_i32_0 = arith.constant 0 : i32
    return %arg0, %c0_i32 : i32, i32
  }
}

</mosaic_0001>

<bundles_post_ra>
// kernel: tpu_custom_call.1
= control target key start
LH: loop header
LB: loop body
LE: loop exit
PB: predicated region body
PF: predicated region fallthrough
CT: control target
= control target key end

     0   :  { %8 = vsyncpa [#allocation3], 0  ;;  %s390_s0 = inlined_call_operand.hbm [shape: f32[2,16], index: 0, kind: input, shape index: {}]   ;;  %s391_s1 = inlined_call_operand.hbm [shape: f32[3,6], index: 1, kind: input, shape index: {}]   ;;  %s392_s2 = inlined_call_operand.vmem [shape: f32[3], index: 2, kind: input, shape index: {}]   ;;  %s393_s3 = inlined_call_operand.hbm [shape: f32[2,33], index: 3, kind: output, shape index: {}]  }
   0x1   :  { %9 = vsyncpa [#allocation5], 0 }
   0x2   :  { %10 = vsyncpa [#allocation6], 0 }
   0x3   :  { %11 = vsyncpa [#allocation4], 0  ;;  %s318_s12 = smov [#allocation2]   ;;  %s36_s16 = sshll.u32 %s392_s2, 4  ;;  %s37_s16 = int_to_ptr.vmem [resolvable:$true] %s36_s16 }
   0x4   :  { %s18_s13 = sshll.u32 %s318_s12, 4  ;;  %s19_s13 = int_to_ptr.vmem [resolvable:$true] %s18_s13 }
   0x5   :  { %s258_s17 = scalar_lea.vmem %s19_s13, 32  ;;  %p263_p1 = scmp.lt.s32.totalorder %s19_s13, %s19_s13 }
   0x6   :  { %p259_p0 = scmp.ne.s32.totalorder %s19_s13, %s258_s17  ;;  %p264_p2 = scmp.lt.s32.totalorder %s258_s17, %s258_s17 }
   0x8   :  { %p265_p3 = por %p264_p2, %p263_p1 }
   0xa   :  { %p266_p4 = pnand %p265_p3, %p259_p0 }
   0xc   :  { %269 = shalt.err (!%p266_p4)
}
   0xd   :  { %21 = dma.hbm_to_vmem [thread:$0]  %s390_s0, 32, %s19_s13, [#allocation3]  }
   0xe   :  { %s319_s20 = smov [#allocation7]   ;;  %s278_s23 = scalar_lea.vmem %s37_s16, 16 }
   0xf   :  { %29 = dma.hbm_to_smem %s391_s1, 64, %s319_s20, [#allocation5]  }
  0x10   :  { %p279_p5 = scmp.ne.s32.totalorder %s37_s16, %s278_s23  ;;  %p283_p6 = scmp.lt.s32.totalorder %s37_s16, %s37_s16 }
  0x11   :  { %p284_p7 = scmp.lt.s32.totalorder %s278_s23, %s278_s23 }
  0x13   :  { %p285_p8 = por %p284_p7, %p283_p6 }
  0x15   :  { %p286_p9 = pnand %p285_p8, %p279_p5 }
  0x17   :  { %289 = shalt.err (!%p286_p9)
}
  0x18   :  { %s320_s2 = smov [#allocation8]  }
  0x19   :  { %39 = dma.vmem_to_smem %s37_s16, 16, %s320_s2, [#allocation6]  }
  0x1a   :  { %310 = dma.done.wait [#allocation3], 32  }
  0x1b   :  { %311 = vsyncadd [#allocation3], 4294967264 }
  0x1c   :  { %312 = dma.done.wait [#allocation5], 64  }
  0x1d   :  { %313 = vsyncadd [#allocation5], 4294967232 }
  0x1e   :  { %314 = dma.done.wait [#allocation6], 16  }
  0x1f   :  { %315 = vsyncadd [#allocation6], 4294967280 }
  0x20   :  { %49 = sfence }
  0x21   :  { %s228_s0 = sld [smem:[#allocation7 + $0x82]]  ;;  %v358_v0 = vld [vmem:[#allocation2] sm:$0x3]  ;;  %s321_s30 = smov 126   ;;  %vm189_vm0 = vcmask 82944   ;;  %vm195_vm1 = vcmask 173144  }
  0x22   :  { %s225_s24 = sld [smem:[#allocation7 + $0x81]]  ;;  %s322_s4 = smov 127   ;;  %vm201_vm2 = vcmask 263344  }
  0x23   :  { %s229_s25 = sld [smem:[#allocation7 + $0x102]]  ;;  %s323_s9 = smov 125  }
  0x24   :  { %s226_s1 = sld [smem:[#allocation7 + $0x101]]  ;;  %s324_s12 = smov 124  }
  0x25   :  { %s232_s26 = sld [smem:[#allocation7 + $0x103]]  ;;  %s325_s14 = smov 123  }
  0x26   :  { %s231_s27 = sld [smem:[#allocation7 + $0x83]]  ;;  %s326_s21 = smov 22  }
  0x27   :  { %v102_v1 = vstv %s228_s0  ;;  %s235_s28 = sld [smem:[#allocation7 + $0x104]]  ;;  %s327_s22 = smov 11  }
  0x28   :  { %v103_v2 = vmul.f32 %v102_v1, %v358_v0  ;;  %v78_v3 = vstv %s225_s24  ;;  %s234_s29 = sld [smem:[#allocation7 + $0x84]]  ;;  %s328_s23 = smov [#allocation9]  }
  0x29   :  { %v79_v4 = vmul.f32 %v78_v3, %v358_v0  ;;  %v110_v5 = vstv %s229_s25  ;;  %s238_s5 = sld [smem:[#allocation7 + $0x105]]  ;;  %s209_s2 = sshll.u32 %s328_s23, 4  ;;  %s210_s2 = int_to_ptr.vmem [resolvable:$true] %s209_s2 }
  0x2a   :  { %105 = vrot.lane.b32.xlu1 %v103_v2, %s321_s30  ;;  %v111_v6 = vmul.f32 %v110_v5, %v358_v0  ;;  %v86_v7 = vstv %s226_s1  ;;  %s237_s6 = sld [smem:[#allocation7 + $0x85]]  ;;  %s290_s0 = scalar_lea.vmem %s210_s2, 32 }
  0x2b   :  { %81 = vrot.lane.b32.xlu0 %v79_v4, %s322_s4  ;;  %v87_v8 = vmul.f32 %v86_v7, %v358_v0  ;;  %v134_v9 = vstv %s232_s26  ;;  %s224_s7 = sld [smem:[#allocation7 + $0x1]]  ;;  %p291_p10 = scmp.ne.s32.totalorder %s210_s2, %s290_s0 }
  0x2c   :  { %v126_v10 = vstv %s231_s27  ;;  %v135_v11 = vmul.f32 %v134_v9, %v358_v0  ;;  %s227_s8 = sld [smem:[#allocation7 + $0x2]]  ;;  %p295_p11 = scmp.lt.s32.totalorder %s210_s2, %s210_s2 }
  0x2d   :  { %v127_v12 = vmul.f32 %v126_v10, %v358_v0  ;;  %v158_v13 = vstv %s235_s28  ;;  %s233_s10 = sld [smem:[#allocation7 + $0x4]]  ;;  %p296_p12 = scmp.lt.s32.totalorder %s290_s0, %s290_s0 }
  0x2e   :  { %113 = vrot.lane.b32.xlu1 %v111_v6, %s321_s30  ;;  %v150_v14 = vstv %s234_s29  ;;  %v159_v15 = vmul.f32 %v158_v13, %v358_v0  ;;  %s230_s11 = sld [smem:[#allocation7 + $0x3]] }
  0x2f   :  { %89 = vrot.lane.b32.xlu0 %v87_v8, %s322_s4  ;;  %v151_v16 = vmul.f32 %v150_v14, %v358_v0  ;;  %v182_v17 = vstv %s238_s5  ;;  %s236_s13 = sld [smem:[#allocation7 + $0x5]]  ;;  %p297_p13 = por %p296_p12, %p295_p11 }
  0x30   :  { %v174_v18 = vstv %s237_s6  ;;  %v183_v19 = vmul.f32 %v182_v17, %v358_v0  ;;  %s223_s15 = sld [smem:[#allocation7 + $0x100]] }
  0x31   :  { %v175_v20 = vmul.f32 %v174_v18, %v358_v0  ;;  %v70_v22 = vstv %s224_s7  ;;  %s222_s16 = sld [smem:[#allocation7 + $0x80]]  ;;  %p298_p0 = pnand %p297_p13, %p291_p10 }
  0x32   :  { %137 = vrot.lane.b32.xlu1 %v135_v11, %s323_s9  ;;  %v94_v21 = vstv %s227_s8  ;;  %v71_v24 = vmul.f32 %v70_v22, %v358_v0  ;;  %s221_s17 = sld [smem:[#allocation8 + $0x2]] }
  0x33   :  { %129 = vrot.lane.b32.xlu0 %v127_v12, %s323_s9  ;;  %v95_v23 = vmul.f32 %v94_v21, %v358_v0  ;;  %v142_v25 = vstv %s233_s10  ;;  %s220_s18 = sld [smem:[#allocation8 + $0x1]] }
  0x34   :  { %v118_v26 = vstv %s230_s11  ;;  %v143_v27 = vmul.f32 %v142_v25, %v358_v0  ;;  %s57_s19 = sld [smem:[#allocation7]] }
  0x35   :  { %v119_v28 = vmul.f32 %v118_v26, %v358_v0  ;;  %v166_v29 = vstv %s236_s13  ;;  %s51_s20 = sld [smem:[#allocation8]] }
  0x36   :  { %161 = vrot.lane.b32.xlu1 %v159_v15, %s324_s12  ;;  %v167_v30 = vmul.f32 %v166_v29, %v358_v0  ;;  %v66_v31 = vstv %s223_s15 }
  0x37   :  { %153 = vrot.lane.b32.xlu0 %v151_v16, %s324_s12  ;;  %v62_v32 = vstv %s222_s16  ;;  %v67_v33 = vmul.f32 %v66_v31, %v358_v0 }
  0x38   :  { %v56_v34 = vstv %s221_s17  ;;  %v63_v36 = vmul.f32 %v62_v32, %v358_v0 }
  0x39   :  { %v54_v37 = vstv %s220_s18  ;;  %v68_v39 = vadd.f32 %v67_v33, %v56_v34 }
  0x3a   :  { %185 = vrot.lane.b32.xlu1 %v183_v19, %s325_s14  ;;  %v64_v40 = vadd.f32 %v63_v36, %v54_v37  ;;  %v58_v48 = vstv %s57_s19 }
  0x3b   :  { %177 = vrot.lane.b32.xlu0 %v175_v20, %s325_s14  ;;  %v59_v54 = vmul.f32 %v58_v48, %v358_v0  ;;  %v52_v56 = vstv %s51_s20 }
  0x3d   :  { %v60_v62 = vadd.f32 %v59_v54, %v52_v56 }
  0x3e   :  { %97 = vrot.lane.b32.xlu1 %v95_v23, %s321_s30 }
  0x3f   :  { %73 = vrot.lane.b32.xlu0 %v71_v24, %s322_s4 }
  0x42   :  { %145 = vrot.lane.b32.xlu1 %v143_v27, %s324_s12 }
  0x43   :  { %121 = vrot.lane.b32.xlu0 %v119_v28, %s323_s9 }
  0x47   :  { %169 = vrot.lane.b32.xlu0 %v167_v30, %s325_s14 }
  0x9c   :  { %v106_v35 = vpop.permute.xlu1 %105 }
  0x9d   :  { %v82_v38 = vpop.permute.xlu0 %81 }
  0x9e   :  { %v84_v44 = vadd.f32 %v82_v38, %v64_v40 }
  0xa0   :  { %v114_v41 = vpop.permute.xlu1 %113  ;;  %v108_v49 = vadd.f32 %v106_v35, %v84_v44 }
  0xa1   :  { %v90_v42 = vpop.permute.xlu0 %89 }
  0xa2   :  { %v92_v43 = vadd.f32 %v90_v42, %v68_v39 }
  0xa4   :  { %v138_v45 = vpop.permute.xlu1 %137  ;;  %v116_v46 = vadd.f32 %v114_v41, %v92_v43 }
  0xa5   :  { %v130_v47 = vpop.permute.xlu0 %129 }
  0xa6   :  { %v140_v51 = vadd.f32 %v138_v45, %v116_v46  ;;  %v132_v53 = vadd.f32 %v130_v47, %v108_v49 }
  0xa8   :  { %v162_v50 = vpop.permute.xlu1 %161 }
  0xa9   :  { %v154_v52 = vpop.permute.xlu0 %153  ;;  %v164_v55 = vadd.f32 %v162_v50, %v140_v51 }
  0xaa   :  { %v156_v57 = vadd.f32 %v154_v52, %v132_v53 }
  0xac   :  { %v186_v58 = vpop.permute.xlu1 %185 }
  0xad   :  { %v188_v59 = vadd.f32 %v186_v58, %v164_v55  ;;  %v178_v60 = vpop.permute.xlu0 %177 }
  0xae   :  { %v180_v61 = vadd.f32 %v178_v60, %v156_v57 }
  0xaf   :  { %198 = vrot.lane.b32.xlu0 %v188_v59, %s326_s21 }
  0xb0   :  { %192 = vrot.lane.b32.xlu1 %v180_v61, %s327_s22  ;;  %v98_v63 = vpop.permute.xlu1 %97 }
  0xb1   :  { %v74_v1 = vpop.permute.xlu0 %73 }
  0xb2   :  { %v76_v2 = vadd.f32 %v74_v1, %v60_v62 }
  0xb4   :  { %v100_v3 = vadd.f32 %v98_v63, %v76_v2  ;;  %v146_v5 = vpop.permute.xlu1 %145 }
  0xb5   :  { %v122_v4 = vpop.permute.xlu0 %121 }
  0xb6   :  { %v124_v6 = vadd.f32 %v122_v4, %v100_v3 }
  0xb8   :  { %v148_v0 = vadd.f32 %v146_v5, %v124_v6 }
  0xb9   :  { %v170_v7 = vpop.permute.xlu0 %169 }
  0xba   :  { %v172_v8 = vadd.f32 %v170_v7, %v148_v0 }
  0xbc   :  { %190 = vst.msk [vmem:[#allocation9] sm:$0x3] %vm189_vm0, %v172_v8 }
 0x121   :  { %v199_v9 = vpop.permute.xlu0 %198 }
 0x122   :  { %v193_v10 = vpop.permute.xlu1 %192 }
 0x123   :  { %196 = vst.msk [vmem:[#allocation9] sm:$0x3] %vm195_vm1, %v193_v10 }
 0x124   :  { %202 = vst.msk [vmem:[#allocation9] sm:$0x3] %vm201_vm2, %v199_v9 }
 0x125   :  { %301 = shalt.err (!%p298_p0)
}
 0x126   :  { %212 = dma.vmem_to_hbm [thread:$0]  %s210_s2, 32, %s393_s3, [#allocation4]  }
 0x127   :  { %316 = dma.done.wait [#allocation4], 32  }
 0x128   :  { %317 = vsyncadd [#allocation4], 4294967264 }
 0x129   :  { %216 = vsyncpa [#allocation3], 1 }
 0x12a   :  { %217 = vsyncpa [#allocation4], 1 }
 0x12b   :  { %218 = vsyncpa [#allocation5], 1 }
 0x12c   :  { %219 = vsyncpa [#allocation6], 1 }

</bundles_post_ra>
